<compile_context>
chip_gen: v7x
topology: tpu7x:2x2x1
jax: 0.10.0
libtpu: 0.0.40
codegen_flags: <defaults>
</compile_context>

<pallas_src>
import functools

import jax
import jax.numpy as jnp
from jax import lax
from jax.experimental import pallas as pl
from jax.experimental.pallas import tpu as pltpu


def _linear_kernel_zh(x_ref, w_ref, b_ref, z_ref, h_ref):
    # h = x @ W  (MXU, f32 accumulation)
    h = jnp.dot(x_ref[...], w_ref[...], preferred_element_type=jnp.float32)
    h_ref[...] = h.astype(h_ref.dtype)
    # z = h @ W.T + b : contract h axis 1 with W axis 1 on the MXU (no
    # materialized transpose of W).
    z = lax.dot_general(
        h.astype(x_ref.dtype), w_ref[...],
        dimension_numbers=(((1,), (1,)), ((), ())),
        preferred_element_type=jnp.float32)
    z_ref[...] = (z + b_ref[...]).astype(z_ref.dtype)


def _linear_kernel_z(x_ref, w_ref, b_ref, z_ref):
    h = jnp.dot(x_ref[...], w_ref[...], preferred_element_type=jnp.float32)
    z = lax.dot_general(
        h.astype(x_ref.dtype), w_ref[...],
        dimension_numbers=(((1,), (1,)), ((), ())),
        preferred_element_type=jnp.float32)
    z_ref[...] = (z + b_ref[...]).astype(z_ref.dtype)


def _round_up(n, m):
    return ((n + m - 1) // m) * m


@functools.partial(jax.jit, static_argnames=("with_activations", "tm"))
def linear_forward(x, W, b, with_activations=False, tm=None):
    """Pallas forward for Linear.  x: (B, D), W: (D, H), b: (D,)."""
    B, D = x.shape
    Din, H = W.shape
    assert D == Din and b.shape == (D,)

    # Lane-dense padding: last dims to multiples of 128; batch to the tile.
    Dp = _round_up(D, 128)
    Hp = _round_up(H, 128)
    if tm is None:
        # Per-step rows: big enough to amortize the ~0.35us/step overhead,
        # small enough that x/z/h tiles + resident W fit well under VMEM.
        tm = min(_round_up(max(B, 8), 8), 512)
    Bp = _round_up(B, tm)

    xp = x if (Bp == B and Dp == D) else jnp.pad(x, ((0, Bp - B), (0, Dp - D)))
    Wp = W if (Dp == D and Hp == H) else jnp.pad(W, ((0, Dp - D), (0, Hp - H)))
    bp = (b if Dp == D else jnp.pad(b, (0, Dp - D))).reshape(1, Dp)

    grid = (Bp // tm,)
    in_specs = [
        pl.BlockSpec((tm, Dp), lambda i: (i, 0)),   # x: streams per batch tile
        pl.BlockSpec((Dp, Hp), lambda i: (0, 0)),   # W: resident across grid
        pl.BlockSpec((1, Dp), lambda i: (0, 0)),    # b: resident across grid
    ]
    z_spec = pl.BlockSpec((tm, Dp), lambda i: (i, 0))

    itemsize = jnp.dtype(x.dtype).itemsize
    flops = 4 * Bp * Dp * Hp  # two matmuls, 2*B*D*H FLOPs each
    bytes_accessed = (Bp * Dp + Dp * Hp + Dp + Bp * Dp) * itemsize

    compiler_params = pltpu.CompilerParams(
        dimension_semantics=("parallel",),   # megacore sharding on v7x
        vmem_limit_bytes=32 * 1024 * 1024,   # re-derive if D/H/tm grow (v7x: 64 MiB phys)
    )

    if with_activations:
        bytes_accessed += Bp * Hp * itemsize
        z_p, h_p = pl.pallas_call(
            _linear_kernel_zh,
            out_shape=(
                jax.ShapeDtypeStruct((Bp, Dp), x.dtype),   # z
                jax.ShapeDtypeStruct((Bp, Hp), x.dtype),   # h
            ),
            grid=grid,
            in_specs=in_specs,
            out_specs=(z_spec, pl.BlockSpec((tm, Hp), lambda i: (i, 0))),
            compiler_params=compiler_params,
            cost_estimate=pl.CostEstimate(
                flops=flops, bytes_accessed=bytes_accessed, transcendentals=0),
        )(xp, Wp, bp)
        z = z_p[:B, :D]
        h = h_p[:B, :H]
        return z, {"h": h, "z": z}

    z_p = pl.pallas_call(
        _linear_kernel_z,
        out_shape=jax.ShapeDtypeStruct((Bp, Dp), x.dtype),
        grid=grid,
        in_specs=in_specs,
        out_specs=z_spec,
        compiler_params=compiler_params,
        cost_estimate=pl.CostEstimate(
            flops=flops, bytes_accessed=bytes_accessed, transcendentals=0),
    )(xp, Wp, bp)
    return z_p[:B, :D]


if __name__ == "__main__":
    key = jax.random.PRNGKey(0)
    k_x, k_w = jax.random.split(key)

    batch, input_dim, hidden_dim = 8, 32, 64

    # Deterministic parameter init mirroring the PyTorch __init__:
    #   W = randn(input_dim, hidden_dim) / sqrt(input_dim);  b = zeros(input_dim)
    W = (jax.random.normal(k_w, (input_dim, hidden_dim), dtype=jnp.float32)
         / jnp.sqrt(jnp.float32(input_dim)))
    b = jnp.zeros((input_dim,), dtype=jnp.float32)

    x = jax.random.normal(k_x, (batch, input_dim), dtype=jnp.float32)

    # Inference path (no h output declared or written back).
    z_only = linear_forward(x, W, b, with_activations=False)
    jax.block_until_ready(z_only)

    # Activation-returning path.
    z, acts = linear_forward(x, W, b, with_activations=True)
    jax.block_until_ready(z)
    jax.block_until_ready(acts["h"])

    # Pure-JAX reference check.
    h_ref = x @ W
    z_ref = h_ref @ W.T + b
    assert jnp.allclose(z_only, z_ref, atol=1e-5, rtol=1e-5)
    assert jnp.allclose(z, z_ref, atol=1e-5, rtol=1e-5)
    assert jnp.allclose(acts["h"], h_ref, atol=1e-5, rtol=1e-5)

    print("KERNEL_OK")
</pallas_src>

<mosaic_0001>
module attributes {stable_mosaic.version = 11 : i64} {
  func.func @_linear_kernel_z(%arg0: i32, %arg1: memref<8x128xf32, #tpu.memory_space<vmem>>, %arg2: memref<128x128xf32, #tpu.memory_space<vmem>>, %arg3: memref<1x128xf32, #tpu.memory_space<vmem>>, %arg4: memref<8x128xf32, #tpu.memory_space<vmem>>) attributes {dimension_semantics = [#tpu.dimension_semantics<parallel>], iteration_bounds = array<i64: 1>, scalar_prefetch = 0 : i64, scratch_operands = 0 : i64, tpu.core_type = #tpu.core_type<tc>, window_params = [{transform_indices = @transform_0, window_bounds = array<i64: 8, 128>}, {pipeline_mode = #tpu.pipeline_mode<synchronous>, transform_indices = @transform_1, window_bounds = array<i64: 128, 128>}, {pipeline_mode = #tpu.pipeline_mode<synchronous>, transform_indices = @transform_2, window_bounds = array<i64: 1, 128>}, {transform_indices = @transform_3, window_bounds = array<i64: 8, 128>}]} {
    %c0 = arith.constant 0 : index
    %c0_0 = arith.constant 0 : index
    %0 = vector.load %arg1[%c0, %c0_0] : memref<8x128xf32, #tpu.memory_space<vmem>>, vector<8x128xf32>
    %c0_1 = arith.constant 0 : index
    %c0_2 = arith.constant 0 : index
    %1 = vector.load %arg2[%c0_1, %c0_2] : memref<128x128xf32, #tpu.memory_space<vmem>>, vector<128x128xf32>
    %cst = arith.constant dense<0.000000e+00> : vector<8x128xf32>
    %2 = tpu.matmul %0, %1, %cst {dimension_numbers = #tpu.dot_dimension_numbers<[1], [0], [0], [1], [0, 0, 1, 1], [], []>} : vector<8x128xf32>, vector<128x128xf32>, vector<8x128xf32> -> vector<8x128xf32>
    %c0_3 = arith.constant 0 : index
    %c0_4 = arith.constant 0 : index
    %3 = vector.load %arg2[%c0_3, %c0_4] : memref<128x128xf32, #tpu.memory_space<vmem>>, vector<128x128xf32>
    %cst_5 = arith.constant dense<0.000000e+00> : vector<8x128xf32>
    %4 = tpu.matmul %2, %3, %cst_5 {dimension_numbers = #tpu.dot_dimension_numbers<[1], [1], [0], [0], [0, 0, 1, 0], [], []>} : vector<8x128xf32>, vector<128x128xf32>, vector<8x128xf32> -> vector<8x128xf32>
    %c0_6 = arith.constant 0 : index
    %c0_7 = arith.constant 0 : index
    %5 = vector.load %arg3[%c0_6, %c0_7] : memref<1x128xf32, #tpu.memory_space<vmem>>, vector<1x128xf32>
    %6 = vector.broadcast %5 : vector<1x128xf32> to vector<8x128xf32>
    %7 = arith.addf %4, %6 : vector<8x128xf32>
    %c0_8 = arith.constant 0 : index
    %c0_9 = arith.constant 0 : index
    %8 = vector.load %arg4[%c0_8, %c0_9] : memref<8x128xf32, #tpu.memory_space<vmem>>, vector<8x128xf32>
    tpu.vector_store %arg4[%c0_8, %c0_9], %7 {strides = array<i32>} : memref<8x128xf32, #tpu.memory_space<vmem>>, vector<8x128xf32>,
    return
  }
  func.func @transform_0(%arg0: i32) -> (i32, i32) {
    %c0_i32 = arith.constant 0 : i32
    %c0_i32_0 = arith.constant 0 : i32
    return %arg0, %c0_i32 : i32, i32
  }
  func.func @transform_1(%arg0: i32) -> (i32, i32) {
    %c0_i32 = arith.constant 0 : i32
    %c0_i32_0 = arith.constant 0 : i32
    %c0_i32_1 = arith.constant 0 : i32
    return %c0_i32, %c0_i32_0 : i32, i32
  }
  func.func @transform_2(%arg0: i32) -> (i32, i32) {
    %c0_i32 = arith.constant 0 : i32
    %c0_i32_0 = arith.constant 0 : i32
    %c0_i32_1 = arith.constant 0 : i32
    return %c0_i32, %c0_i32_0 : i32, i32
  }
  func.func @transform_3(%arg0: i32) -> (i32, i32) {
    %c0_i32 = arith.constant 0 : i32
    %c0_i32_0 = arith.constant 0 : i32
    return %arg0, %c0_i32 : i32, i32
  }
}

</mosaic_0001>

<bundles_post_ra>
// kernel: linear_forward.1
= control target key start
LH: loop header
LB: loop body
LE: loop exit
PB: predicated region body
PF: predicated region fallthrough
CT: control target
= control target key end

     0   :  { %v375_v3 = vmov 0.0|0.0   ;;  %vm376_vm0 = vmmov 0   ;;  %v377_v6 = vmov 0.0   ;;  %s465_s0 = inlined_call_operand.vmem [shape: f32[8,128], index: 0, kind: input, shape index: {}]   ;;  %s466_s1 = inlined_call_operand.vmem [shape: f32[128,128], index: 1, kind: input, shape index: {}]   ;;  %s467_s2 = inlined_call_operand.vmem [shape: f32[1,128], index: 2, kind: input, shape index: {}]   ;;  %s468_s3 = inlined_call_operand.hbm [shape: f32[8,128], index: 3, kind: output, shape index: {}]  }
   0x1   :  { %v16_v0 = vld [vmem:[%s466_s1] sm:$0xff]  ;;  %v17_v1 = vld [vmem:[%s466_s1 + $0x8] sm:$0xff]  ;;  %v18_v2 = vld [vmem:[%s466_s1 + $0x10] sm:$0xff]  ;;  %299 = vmatprep.subr.bf16.mxu0 %v375_v3  ;;  %261 = vmatprep.mubr.msk.f32.mxu0 %vm376_vm0, %v377_v6 }
   0x2   :  { %v300_v4 = vpack.c.bf16 %v17_v1, %v16_v0  ;;  %v19_v5 = vld [vmem:[%s466_s1 + $0x18] sm:$0xff]  ;;  %323 = vmatprep.subr.bf16.mxu1 %v375_v3  ;;  %296 = vmatprep.mubr.msk.f32.mxu1 %vm376_vm0, %v377_v6  ;;  %v20_v8 = vld [vmem:[%s466_s1 + $0x20] sm:$0xff]  ;;  %v21_v9 = vld [vmem:[%s466_s1 + $0x28] sm:$0xff] }
   0x3   :  { %v303_v7 = vpack.c.bf16 %v19_v5, %v18_v2 }
   0x4   :  { %301 = vmatpush3.bf16.msra.mxu0 %v300_v4  ;;  %325 = vmatpush3.bf16.xpose.msra.mxu1 %v300_v4 }
   0x5   :  { %302 = vmatprep.subr.bf16.mxu0 %v375_v3  ;;  %326 = vmatprep.subr.bf16.mxu1 %v375_v3 }
   0x6   :  { %8 = vsyncpa [#allocation3], 0  ;;  %v306_v10 = vpack.c.bf16 %v21_v9, %v20_v8  ;;  %v22_v11 = vld [vmem:[%s466_s1 + $0x30] sm:$0xff]  ;;  %v23_v12 = vld [vmem:[%s466_s1 + $0x38] sm:$0xff]  ;;  %s378_s20 = smov [#allocation2]  }
   0x7   :  { %v309_v13 = vpack.c.bf16 %v23_v12, %v22_v11  ;;  %v24_v14 = vld [vmem:[%s466_s1 + $0x40] sm:$0xff]  ;;  %v25_v15 = vld [vmem:[%s466_s1 + $0x48] sm:$0xff]  ;;  %v26_v17 = vld [vmem:[%s466_s1 + $0x50] sm:$0xff]  ;;  %s186_s21 = sshll.u32 %s378_s20, 4  ;;  %s187_s21 = int_to_ptr.vmem [resolvable:$true] %s186_s21 }
   0x8   :  { %304 = vmatpush3.bf16.msra.mxu0 %v303_v7  ;;  %v312_v16 = vpack.c.bf16 %v25_v15, %v24_v14  ;;  %v27_v18 = vld [vmem:[%s466_s1 + $0x58] sm:$0xff]  ;;  %v28_v20 = vld [vmem:[%s466_s1 + $0x60] sm:$0xff]  ;;  %v29_v21 = vld [vmem:[%s466_s1 + $0x68] sm:$0xff]  ;;  %p356_p1 = scmp.lt.s32.totalorder %s187_s21, %s187_s21 }
   0x9   :  { %305 = vmatprep.subr.bf16.mxu0 %v375_v3  ;;  %v315_v19 = vpack.c.bf16 %v27_v18, %v26_v17  ;;  %v318_v22 = vpack.c.bf16 %v29_v21, %v28_v20  ;;  %v30_v23 = vld [vmem:[%s466_s1 + $0x70] sm:$0xff]  ;;  %v31_v24 = vld [vmem:[%s466_s1 + $0x78] sm:$0xff]  ;;  %v15_v26 = vld [vmem:[%s465_s0] sm:$0xff]  ;;  %s351_s0 = scalar_lea.vmem %s187_s21, 128 }
   0xa   :  { %v321_v25 = vpack.c.bf16 %v31_v24, %v30_v23  ;;  %v194_v29 = vld [vmem:[%s467_s2] ss:$0 sm:$0xff]  ;;  %p352_p0 = scmp.ne.s32.totalorder %s187_s21, %s351_s0  ;;  %p357_p2 = scmp.lt.s32.totalorder %s351_s0, %s351_s0 }
   0xc   :  { %307 = vmatpush3.bf16.msra.mxu0 %v306_v10  ;;  %328 = vmatpush3.bf16.xpose.msra.mxu1 %v303_v7  ;;  %p358_p3 = por %p357_p2, %p356_p1 }
   0xd   :  { %308 = vmatprep.subr.bf16.mxu0 %v375_v3  ;;  %329 = vmatprep.subr.bf16.mxu1 %v375_v3 }
   0xe   :  { %p359_p4 = pnand %p358_p3, %p352_p0 }
  0x10   :  { %310 = vmatpush3.bf16.msra.mxu0 %v309_v13 }
  0x11   :  { %311 = vmatprep.subr.bf16.mxu0 %v375_v3 }
  0x14   :  { %313 = vmatpush3.bf16.msra.mxu0 %v312_v16  ;;  %331 = vmatpush3.bf16.xpose.msra.mxu1 %v306_v10 }
  0x15   :  { %314 = vmatprep.subr.bf16.mxu0 %v375_v3  ;;  %332 = vmatprep.subr.bf16.mxu1 %v375_v3 }
  0x18   :  { %316 = vmatpush3.bf16.msra.mxu0 %v315_v19 }
  0x19   :  { %317 = vmatprep.subr.bf16.mxu0 %v375_v3 }
  0x1c   :  { %319 = vmatpush3.bf16.msra.mxu0 %v318_v22  ;;  %334 = vmatpush3.bf16.xpose.msra.mxu1 %v309_v13 }
  0x1d   :  { %320 = vmatprep.subr.bf16.mxu0 %v375_v3  ;;  %335 = vmatprep.subr.bf16.mxu1 %v375_v3 }
  0x20   :  { %322 = vmatpush3.bf16.msra.mxu0 %v321_v25 }
  0x23   :  { %262 = vmatmul.mubr.f32.vlgmr.msra.gmra.mrb[0].mxu0 %v15_v26 }
  0x24   :  { %337 = vmatpush3.bf16.xpose.msra.mxu1 %v312_v16 }
  0x25   :  { %338 = vmatprep.subr.bf16.mxu1 %v375_v3 }
  0x2c   :  { %340 = vmatpush3.bf16.xpose.msra.mxu1 %v315_v19 }
  0x2d   :  { %341 = vmatprep.subr.bf16.mxu1 %v375_v3 }
  0x34   :  { %343 = vmatpush3.bf16.xpose.msra.mxu1 %v318_v22 }
  0x35   :  { %344 = vmatprep.subr.bf16.mxu1 %v375_v3 }
  0x3c   :  { %346 = vmatpush3.bf16.xpose.msra.mxu1 %v321_v25 }
  0xf6   :  { %v98_v27 = vpop.f32.mrb[0].mxu0 }
  0xf7   :  { %v263_v28 = vpop.f32.mrb[1].mxu0  ;;  %297 = vmatmul.mubr.f32.vlgmr.msra.gmra.mrb[0].mxu1 %v98_v27 }
 0x1ca   :  { %v175_v30 = vpop.f32.mrb[0].mxu1 }
 0x1cb   :  { %v176_v31 = vadd.f32 %v194_v29, %v175_v30  ;;  %v298_v32 = vpop.f32.mrb[1].mxu1 }
 0x1cd   :  { %179 = vst [vmem:[#allocation2] sm:$0xff] %v176_v31 }
 0x1ce   :  { %362 = shalt.err (!%p359_p4)
}
 0x1cf   :  { %s363_s24 = scalar_lea.hbm %s468_s3, 128 }
 0x1d0   :  { %p364_p5 = scmp.ne.s32.totalorder %s468_s3, %s363_s24  ;;  %p367_p6 = scmp.lt.u32.totalorder %s363_s24, %s468_s3 }
 0x1d2   :  { %p369_p7 = pnand %p367_p6, %p364_p5 }
 0x1d4   :  { %372 = shalt.err (!%p369_p7)
}
 0x1d5   :  { %189 = dma.vmem_to_hbm [thread:$0]  %s187_s21, 128, %s468_s3, [#allocation3]  }
 0x1d6   :  { %373 = dma.done.wait [#allocation3], 128  }
 0x1d7   :  { %374 = vsyncadd [#allocation3], 4294967168 }
 0x1d8   :  { %193 = vsyncpa [#allocation3], 1 }

</bundles_post_ra>
